<compile_context>
chip_gen: v5e
topology: v5e:2x2
jax: 0.10.0
libtpu: 0.0.40
codegen_flags: <defaults>
</compile_context>

<pallas_src>
import jax
import jax.numpy as jnp
from jax.experimental import pallas as pl
from jax.experimental.pallas import tpu as pltpu


def _round_up(n: int, m: int) -> int:
    return ((n + m - 1) // m) * m


def mlp_kernel(x_ref, w1_ref, b1_ref, w2_ref, b2_ref, w3r_ref, b3_ref, o_ref):
    # fc1: bf16 MXU inputs, f32 accumulate; bias + ReLU in f32 on the VPU.
    h1 = jnp.dot(x_ref[...], w1_ref[...], preferred_element_type=jnp.float32)
    h1 = jnp.maximum(h1 + b1_ref[...], 0.0)
    # fc2: cast activations back to bf16 only for the MXU.
    h2 = jnp.dot(h1.astype(w2_ref.dtype), w2_ref[...],
                 preferred_element_type=jnp.float32)
    h2 = jnp.maximum(h2 + b2_ref[...], 0.0)
    # fc3 (out_features == 1): VPU multiply + cross-lane (XLU) sum instead of a
    # lane-sparse N=1 MXU matmul.
    z = jnp.sum(h2 * w3r_ref[...], axis=-1, keepdims=True) + b3_ref[...]
    o_ref[...] = jax.nn.sigmoid(z)


def simple_nn_forward(x, params, *, tm: int = 1024):
    """x: (B, input_dim) f32. Returns sigmoid MLP output (B, 1) f32."""
    w1, b1, w2, b2, w3, b3 = params
    B, D = x.shape

    # Batch tile: large to amortize per-step overhead, clamped for tiny batches.
    TM = min(tm, _round_up(B, 8))
    B_pad = _round_up(B, TM)
    if B_pad != B:
        x = jnp.pad(x, ((0, B_pad - B), (0, 0)))

    # bf16 only on the MXU input streams; biases / w3 row stay f32 (tiny).
    x_bf = x.astype(jnp.bfloat16)
    w1_bf = w1.astype(jnp.bfloat16)
    w2_bf = w2.astype(jnp.bfloat16)
    w3_row = jnp.reshape(w3, (1, -1)).astype(jnp.float32)  # (1, 32)
    b1 = b1.astype(jnp.float32)
    b2 = b2.astype(jnp.float32)
    b3 = b3.astype(jnp.float32)

    grid = (B_pad // TM,)
    const = lambda i: (0, 0)  # weights: same block every step -> VMEM resident

    out = pl.pallas_call(
        mlp_kernel,
        out_shape=jax.ShapeDtypeStruct((B_pad, 1), jnp.float32),
        grid=grid,
        in_specs=[
            pl.BlockSpec((TM, D), lambda i: (i, 0)),          # x tile (pipelined)
            pl.BlockSpec(w1_bf.shape, const),                  # (D, 64)
            pl.BlockSpec(b1.shape, const),                     # (1, 64)
            pl.BlockSpec(w2_bf.shape, const),                  # (64, 32)
            pl.BlockSpec(b2.shape, const),                     # (1, 32)
            pl.BlockSpec(w3_row.shape, const),                 # (1, 32)
            pl.BlockSpec(b3.shape, const),                     # (1, 1)
        ],
        out_specs=pl.BlockSpec((TM, 1), lambda i: (i, 0)),
        compiler_params=pltpu.CompilerParams(
            dimension_semantics=("parallel",),
        ),
    )(x_bf, w1_bf, b1, w2_bf, b2, w3_row, b3)

    return out[:B]


def init_params(key, input_dim):
    # Mimics PyTorch nn.Linear default init: U(-1/sqrt(fan_in), 1/sqrt(fan_in)).
    # Weights are stored as (in_features, out_features) so forward is y = x @ W + b.
    def linear(key, fan_in, fan_out):
        kw, kb = jax.random.split(key)
        bound = 1.0 / jnp.sqrt(fan_in)
        w = jax.random.uniform(kw, (fan_in, fan_out), jnp.float32, -bound, bound)
        b = jax.random.uniform(kb, (1, fan_out), jnp.float32, -bound, bound)
        return w, b

    k1, k2, k3 = jax.random.split(key, 3)
    w1, b1 = linear(k1, input_dim, 64)
    w2, b2 = linear(k2, 64, 32)
    w3, b3 = linear(k3, 32, 1)
    return w1, b1, w2, b2, w3, b3


def reference_forward(x, params):
    # Pure-f32 reference with the original module semantics.
    w1, b1, w2, b2, w3, b3 = params
    h1 = jnp.maximum(x @ w1 + b1, 0.0)
    h2 = jnp.maximum(h1 @ w2 + b2, 0.0)
    return jax.nn.sigmoid(h2 @ w3 + b3)


if __name__ == "__main__":
    key = jax.random.PRNGKey(0)
    kx, kp = jax.random.split(key)

    batch, input_dim = 8, 16
    x = jax.random.normal(kx, (batch, input_dim), jnp.float32)
    params = init_params(kp, input_dim)

    out = simple_nn_forward(x, params)
    jax.block_until_ready(out)

    ref = reference_forward(x, params)
    assert out.shape == (batch, 1)
    # bf16 MXU inputs vs f32 reference: allow small quantization error.
    assert jnp.allclose(out, ref, atol=1e-2, rtol=1e-2), (
        float(jnp.max(jnp.abs(out - ref)))
    )

    print("KERNEL_OK")
</pallas_src>

<mosaic_0001>
module attributes {stable_mosaic.version = 11 : i64} {
  func.func @mlp_kernel(%arg0: i32, %arg1: memref<8x16xbf16, #tpu.memory_space<vmem>>, %arg2: memref<16x64xbf16, #tpu.memory_space<vmem>>, %arg3: memref<1x64xf32, #tpu.memory_space<vmem>>, %arg4: memref<64x32xbf16, #tpu.memory_space<vmem>>, %arg5: memref<1x32xf32, #tpu.memory_space<vmem>>, %arg6: memref<1x32xf32, #tpu.memory_space<vmem>>, %arg7: memref<1x1xf32, #tpu.memory_space<vmem>>, %arg8: memref<8x1xf32, #tpu.memory_space<vmem>>) attributes {dimension_semantics = [#tpu.dimension_semantics<parallel>], iteration_bounds = array<i64: 1>, scalar_prefetch = 0 : i64, scratch_operands = 0 : i64, tpu.core_type = #tpu.core_type<tc>, window_params = [{transform_indices = @transform_0, window_bounds = array<i64: 8, 16>}, {pipeline_mode = #tpu.pipeline_mode<synchronous>, transform_indices = @transform_1, window_bounds = array<i64: 16, 64>}, {pipeline_mode = #tpu.pipeline_mode<synchronous>, transform_indices = @transform_2, window_bounds = array<i64: 1, 64>}, {pipeline_mode = #tpu.pipeline_mode<synchronous>, transform_indices = @transform_3, window_bounds = array<i64: 64, 32>}, {pipeline_mode = #tpu.pipeline_mode<synchronous>, transform_indices = @transform_4, window_bounds = array<i64: 1, 32>}, {pipeline_mode = #tpu.pipeline_mode<synchronous>, transform_indices = @transform_5, window_bounds = array<i64: 1, 32>}, {pipeline_mode = #tpu.pipeline_mode<synchronous>, transform_indices = @transform_6, window_bounds = array<i64: 1, 1>}, {transform_indices = @transform_7, window_bounds = array<i64: 8, 1>}]} {
    %c0 = arith.constant 0 : index
    %c0_0 = arith.constant 0 : index
    %0 = vector.load %arg1[%c0, %c0_0] : memref<8x16xbf16, #tpu.memory_space<vmem>>, vector<8x16xbf16>
    %c0_1 = arith.constant 0 : index
    %c0_2 = arith.constant 0 : index
    %1 = vector.load %arg2[%c0_1, %c0_2] : memref<16x64xbf16, #tpu.memory_space<vmem>>, vector<16x64xbf16>
    %cst = arith.constant dense<0.000000e+00> : vector<8x64xf32>
    %2 = tpu.matmul %0, %1, %cst {dimension_numbers = #tpu.dot_dimension_numbers<[1], [0], [0], [1], [0, 0, 1, 1], [], []>} : vector<8x16xbf16>, vector<16x64xbf16>, vector<8x64xf32> -> vector<8x64xf32>
    %c0_3 = arith.constant 0 : index
    %c0_4 = arith.constant 0 : index
    %3 = vector.load %arg3[%c0_3, %c0_4] : memref<1x64xf32, #tpu.memory_space<vmem>>, vector<1x64xf32>
    %4 = vector.broadcast %3 : vector<1x64xf32> to vector<8x64xf32>
    %5 = arith.addf %2, %4 : vector<8x64xf32>
    %cst_5 = arith.constant 0.000000e+00 : f32
    %6 = vector.broadcast %cst_5 : f32 to vector<8x64xf32>
    %7 = arith.maximumf %5, %6 : vector<8x64xf32>
    %8 = arith.truncf %7 : vector<8x64xf32> to vector<8x64xbf16>
    %c0_6 = arith.constant 0 : index
    %c0_7 = arith.constant 0 : index
    %9 = vector.load %arg4[%c0_6, %c0_7] : memref<64x32xbf16, #tpu.memory_space<vmem>>, vector<64x32xbf16>
    %cst_8 = arith.constant dense<0.000000e+00> : vector<8x32xf32>
    %10 = tpu.matmul %8, %9, %cst_8 {dimension_numbers = #tpu.dot_dimension_numbers<[1], [0], [0], [1], [0, 0, 1, 1], [], []>} : vector<8x64xbf16>, vector<64x32xbf16>, vector<8x32xf32> -> vector<8x32xf32>
    %c0_9 = arith.constant 0 : index
    %c0_10 = arith.constant 0 : index
    %11 = vector.load %arg5[%c0_9, %c0_10] : memref<1x32xf32, #tpu.memory_space<vmem>>, vector<1x32xf32>
    %12 = vector.broadcast %11 : vector<1x32xf32> to vector<8x32xf32>
    %13 = arith.addf %10, %12 : vector<8x32xf32>
    %cst_11 = arith.constant 0.000000e+00 : f32
    %14 = vector.broadcast %cst_11 : f32 to vector<8x32xf32>
    %15 = arith.maximumf %13, %14 : vector<8x32xf32>
    %c0_12 = arith.constant 0 : index
    %c0_13 = arith.constant 0 : index
    %16 = vector.load %arg6[%c0_12, %c0_13] : memref<1x32xf32, #tpu.memory_space<vmem>>, vector<1x32xf32>
    %17 = vector.broadcast %16 : vector<1x32xf32> to vector<8x32xf32>
    %18 = arith.mulf %15, %17 : vector<8x32xf32>
    %cst_14 = arith.constant dense<0.000000e+00> : vector<8xf32>
    %19 = vector.multi_reduction <add>, %18, %cst_14 [1] : vector<8x32xf32> to vector<8xf32>
    %20 = vector.shape_cast %19 : vector<8xf32> to vector<8x1xf32>
    %c0_15 = arith.constant 0 : index
    %c0_16 = arith.constant 0 : index
    %21 = vector.load %arg7[%c0_15, %c0_16] : memref<1x1xf32, #tpu.memory_space<vmem>>, vector<1x1xf32>
    %22 = vector.broadcast %21 : vector<1x1xf32> to vector<8x1xf32>
    %23 = arith.addf %20, %22 : vector<8x1xf32>
    %24 = arith.negf %23 : vector<8x1xf32>
    %25 = math.exp %24 : vector<8x1xf32>
    %cst_17 = arith.constant 1.000000e+00 : f32
    %26 = vector.broadcast %cst_17 : f32 to vector<8x1xf32>
    %27 = arith.addf %26, %25 : vector<8x1xf32>
    %28 = arith.divf %26, %27 : vector<8x1xf32>
    %c0_18 = arith.constant 0 : index
    %c0_19 = arith.constant 0 : index
    %29 = vector.load %arg8[%c0_18, %c0_19] : memref<8x1xf32, #tpu.memory_space<vmem>>, vector<8x1xf32>
    tpu.vector_store %arg8[%c0_18, %c0_19], %28 {strides = array<i32>} : memref<8x1xf32, #tpu.memory_space<vmem>>, vector<8x1xf32>,
    return
  }
  func.func @transform_0(%arg0: i32) -> (i32, i32) {
    %c0_i32 = arith.constant 0 : i32
    %c0_i32_0 = arith.constant 0 : i32
    return %arg0, %c0_i32 : i32, i32
  }
  func.func @transform_1(%arg0: i32) -> (i32, i32) {
    %c0_i32 = arith.constant 0 : i32
    %c0_i32_0 = arith.constant 0 : i32
    %c0_i32_1 = arith.constant 0 : i32
    return %c0_i32, %c0_i32_0 : i32, i32
  }
  func.func @transform_2(%arg0: i32) -> (i32, i32) {
    %c0_i32 = arith.constant 0 : i32
    %c0_i32_0 = arith.constant 0 : i32
    %c0_i32_1 = arith.constant 0 : i32
    return %c0_i32, %c0_i32_0 : i32, i32
  }
  func.func @transform_3(%arg0: i32) -> (i32, i32) {
    %c0_i32 = arith.constant 0 : i32
    %c0_i32_0 = arith.constant 0 : i32
    %c0_i32_1 = arith.constant 0 : i32
    return %c0_i32, %c0_i32_0 : i32, i32
  }
  func.func @transform_4(%arg0: i32) -> (i32, i32) {
    %c0_i32 = arith.constant 0 : i32
    %c0_i32_0 = arith.constant 0 : i32
    %c0_i32_1 = arith.constant 0 : i32
    return %c0_i32, %c0_i32_0 : i32, i32
  }
  func.func @transform_5(%arg0: i32) -> (i32, i32) {
    %c0_i32 = arith.constant 0 : i32
    %c0_i32_0 = arith.constant 0 : i32
    %c0_i32_1 = arith.constant 0 : i32
    return %c0_i32, %c0_i32_0 : i32, i32
  }
  func.func @transform_6(%arg0: i32) -> (i32, i32) {
    %c0_i32 = arith.constant 0 : i32
    %c0_i32_0 = arith.constant 0 : i32
    %c0_i32_1 = arith.constant 0 : i32
    return %c0_i32, %c0_i32_0 : i32, i32
  }
  func.func @transform_7(%arg0: i32) -> (i32, i32) {
    %c0_i32 = arith.constant 0 : i32
    %c0_i32_0 = arith.constant 0 : i32
    return %arg0, %c0_i32 : i32, i32
  }
}

</mosaic_0001>

<bundles_post_ra>
// kernel: tpu_custom_call.1
= control target key start
LH: loop header
LB: loop body
LE: loop exit
PB: predicated region body
PF: predicated region fallthrough
CT: control target
= control target key end

     0   :  { %vm42_vm0 = vcmask 130048   ;;  %vm97_vm1 = vcmask 523264   ;;  %vm120_vm2 = vcmask 261120   ;;  %vm148_vm6 = vcmask 7168   ;;  %s263_s1 = inlined_call_operand.vmem [shape: bf16[16,64], index: 1, kind: input, shape index: {}]   ;;  %s264_s0 = inlined_call_operand.vmem [shape: bf16[8,16], index: 0, kind: input, shape index: {}]   ;;  %s265_s3 = inlined_call_operand.vmem [shape: bf16[64,32], index: 3, kind: input, shape index: {}]   ;;  %s266_s2 = inlined_call_operand.vmem [shape: f32[1,64], index: 2, kind: input, shape index: {}]   ;;  %s267_s4 = inlined_call_operand.vmem [shape: f32[1,32], index: 4, kind: input, shape index: {}]   ;;  %s268_s5 = inlined_call_operand.vmem [shape: f32[1,32], index: 5, kind: input, shape index: {}]   ;;  %s269_s6 = inlined_call_operand.<no memory space> [shape: f32[1,1], index: 6, kind: input, shape index: {}]   ;;  %s270_s7 = inlined_call_operand.vmem [shape: f32[8,1], index: 7, kind: output, shape index: {}]  }
   0x1   :  { %v177_v0 = vld [vmem:[%s263_s1] sm:$0xff]  ;;  %v181_v1 = vld [vmem:[%s265_s3 + $0x18] sm:$0xff]  ;;  %v180_v3 = vld [vmem:[%s265_s3 + $0x10] sm:$0xff]  ;;  %v12_v12 = vstv %s269_s6 }
   0x2   :  { %53 = vmatpush.bf16.msra.mxu0 %v177_v0  ;;  %v29_v2 = vld [vmem:[%s264_s0] sm:$0xf]  ;;  %105 = vmatpush.bf16.msra.mxu1 %v181_v1  ;;  %v179_v4 = vld [vmem:[%s265_s3 + $0x8] sm:$0xff]  ;;  %13 = vst [vmem:[#allocation2] sm:$0x1] %v12_v12 }
   0x3   :  { %v178_v5 = vld [vmem:[%s265_s3] sm:$0xff] }
   0x4   :  { %v182_v6 = vld [vmem:[%s266_s2] ss:$0 sm:$0xff] }
   0x5   :  { %158 = vmatmul.msk.bf16.vlgmr.msra.gmra.mxu0 %vm42_vm0, %v29_v2  ;;  %v183_v13 = vld [vmem:[%s267_s4] ss:$0 sm:$0xff] }
   0x6   :  { %106 = vmatpush.bf16.msra.mxu1 %v180_v3  ;;  %v184_v16 = vld [vmem:[%s268_s5] ss:$0 sm:$0xff] }
   0x9   :  { %v185_v21 = vld [vmem:[#allocation2] ss:$0 sm:$0xff] }
   0xa   :  { %107 = vmatpush.bf16.msra.mxu1 %v179_v4 }
   0xe   :  { %108 = vmatpush.bf16.msra.mxu1 %v178_v5 }
  0x82   :  { %v55_v7 = vpop.f32.mrf.mxu0 }
  0x83   :  { %v56_v8 = vadd.f32 %v182_v6, %v55_v7 }
  0x85   :  { %v59_v9 = vmax.f32 %v56_v8, 0.0 }
  0x87   :  { %v60_v10 = vpack.c.bf16 %v59_v9, %v59_v9 }
  0x89   :  { %175 = vmatmul.msk.bf16.vlgmr.msra.gmra.mxu1 %vm97_vm1, %v60_v10 }
  0x8a   :  { %v57_v11 = vpop.f32.mrf.mxu0 }
 0x106   :  { %v110_v14 = vpop.f32.mrf.mxu1 }
 0x107   :  { %v111_v15 = vadd.f32 %v183_v13, %v110_v14 }
 0x109   :  { %v114_v17 = vmax.f32 %v111_v15, 0.0 }
 0x10b   :  { %v119_v18 = vmul.f32 %v184_v16, %v114_v17 }
 0x10d   :  { %v121_v19 = vsel %vm120_vm2, %v119_v18, 0.0 }
 0x10e   :  { %v112_v20 = vpop.f32.mrf.mxu1  ;;  %122 = vadd.xlane.f32.xlu0 %v121_v19 }
 0x181   :  { %v123_v22 = vpop.xlane.xlu0 %122 }
 0x182   :  { %v128_v23 = vadd.f32 %v185_v21, %v123_v22 }
 0x184   :  { %v176_v24 = vmul.f32 -1.442695, %v128_v23 }
 0x186   :  { %186 = vpow2.f32 %v176_v24 }
 0x18c   :  { %v187_v25 = vpop.eup %186 }
 0x18d   :  { %v132_v26 = vadd.f32 1.0, %v187_v25 }
 0x18f   :  { %188 = vrcp.f32 %v132_v26  ;;  %v144_v30 = vand.u32 2147483648, %v132_v26  ;;  %v142_v32 = vand.u32 2147483647, %v132_v26  ;;  %vm138_vm4 = vweird.f32 %v132_v26 }
 0x191   :  { %v145_v34 = vor.u32 1.1754944e-38, %v144_v30  ;;  %vm143_vm7 = vcmp.eq.f32.partialorder %v142_v32, 8.507059e+37 }
 0x195   :  { %v189_v27 = vpop.eup %188 }
 0x196   :  { %v134_v28 = vmul.f32 %v189_v27, %v132_v26  ;;  %vm139_vm3 = vweird.f32 %v189_v27 }
 0x197   :  { %vm140_vm5 = vmor %vm138_vm4, %vm139_vm3 }
 0x198   :  { %v135_v29 = vsub.f32 1.0, %v134_v28 }
 0x19a   :  { %v136_v31 = vmul.f32 %v189_v27, %v135_v29 }
 0x19c   :  { %v137_v33 = vadd.f32 %v189_v27, %v136_v31 }
 0x19e   :  { %v141_v35 = vsel %vm140_vm5, %v189_v27, %v137_v33 }
 0x19f   :  { %v146_v36 = vsel %vm143_vm7, %v145_v34, %v141_v35 }
 0x1a0   :  { %149 = vst.msk [vmem:[%s270_s7] sm:$0xff] %vm148_vm6, %v146_v36 }

</bundles_post_ra>
